<compile_context>
chip_gen: v5e
topology: v5e:2x2
jax: 0.10.0
libtpu: 0.0.40
codegen_flags: <defaults>
</compile_context>

<pallas_src>
import functools

import jax
import jax.numpy as jnp
from jax.experimental import pallas as pl
from jax.experimental.pallas import tpu as pltpu


def _round_up(x: int, m: int) -> int:
    return (x + m - 1) // m * m


def _fused_mlp_kernel(x_ref, b_ref, *refs, layer_dims, bias_offsets):
    """Whole MLP on one transposed activation tile (batch on the lane axis).

    x_ref : [K0, tm]         (f32)   activations, batch rides lanes
    b_ref : [sum_N_pad, 1]   (f32)   all biases packed, 8-row aligned segments
    refs  : (w_0, ..., w_{L-1}, o_ref)
    w_i   : [N_i, K_i]       (bf16)  native torch nn.Linear layout
    o_ref : [N_{L-1}, tm]    (f32)
    """
    o_ref = refs[-1]
    w_refs = refs[:-1]
    num_layers = len(w_refs)

    h = x_ref[...].astype(jnp.float32)                       # [K0, tm]
    # Static unroll: per-layer shapes differ; the visible body lets the LLO
    # scheduler overlap layer i's MXU matmul with layer i-1's EUP tanh.
    for i in range(num_layers):
        n_i = layer_dims[i + 1]
        off = bias_offsets[i]
        w = w_refs[i][...]                                   # [n_i, k_i] bf16
        b = b_ref[off:off + n_i, :]                          # [n_i, 1]   f32
        # bf16 x bf16 on the MXU, f32 accumulate; lane axis (= batch) stays dense.
        h = jnp.dot(w, h.astype(jnp.bfloat16),
                    preferred_element_type=jnp.float32) + b  # [n_i, tm]
        if i < num_layers - 1:                               # hidden layers only
            h = jnp.tanh(h)
    o_ref[...] = h.astype(o_ref.dtype)


def mlp_forward(params, x, *, block_m: int = 2048):
    """Fused MLP forward.

    x      : [M, K0]
    params : list of (w [N_i, K_i] (stored bf16 in VMEM), b [N_i] f32),
             i.e. native torch nn.Linear weight layout.
    returns: [M, N_{L-1}] in x.dtype (same layout the PyTorch module produces).
    """
    M, k0 = x.shape
    num_layers = len(params)
    layer_dims = [k0] + [int(w.shape[0]) for w, _ in params]
    n_out = layer_dims[-1]

    # ---- lane-dense dataflow: batch rides the 128-lane axis -----------------
    x_t = x.T                                                 # [K0, M]
    weights = [w.astype(jnp.bfloat16) for w, _ in params]     # bf16 in HBM/VMEM

    # Pack all biases into one f32 [sum_N_pad, 1] input (single DMA descriptor
    # instead of L tiny ones); each segment starts on an 8-sublane boundary.
    bias_offsets, segs, off = [], [], 0
    for _, b in params:
        n_i = int(b.shape[0])
        bias_offsets.append(off)
        n_pad = _round_up(n_i, 8)
        segs.append(jnp.pad(b.astype(jnp.float32), (0, n_pad - n_i)))
        off += n_pad
    bias_packed = jnp.concatenate(segs).reshape(off, 1)

    # ---- batch tiling --------------------------------------------------------
    if M < 256:
        tm = M                    # single block; block_shape == full array dims
    else:
        # >= 2 lane tiles (multiples of 128) so both v7x TensorCores get work
        # and every output store is an unmasked, lane-dense vst.
        tm = min(block_m, max(128, _round_up(pl.cdiv(M, 2), 128)))
    grid = (pl.cdiv(M, tm),)

    # ---- explicit VMEM budget (v7x: 64 MiB physical / 32 MiB scoped default;
    # v5e scoped default is only 16 MiB) --------------------------------------
    weight_bytes = sum(w.size * 2 for w in weights)            # bf16, 1-buffered
    bias_bytes = bias_packed.size * 4
    io_bytes = 2 * tm * (k0 * x.dtype.itemsize + n_out * 4)    # 2x-buffered tiles
    act_bytes = 2 * tm * max(layer_dims) * 4                   # f32 staging
    needed = weight_bytes + bias_bytes + io_bytes + act_bytes
    vmem_limit = int(min(max(2 * needed, 16 << 20), 48 << 20))
    # TODO(synk): if weight_bytes alone ever approaches this budget (large
    # hidden dims on v7x), tile the largest layer over K/N with
    # pltpu.emit_pipeline instead of keeping the whole MLP VMEM-resident.

    flops = 2 * M * sum(layer_dims[i] * layer_dims[i + 1] for i in range(num_layers))
    transcendentals = M * sum(layer_dims[1:-1])
    bytes_accessed = (x.size * x.dtype.itemsize + weight_bytes + bias_bytes
                      + M * n_out * x.dtype.itemsize)
    cost = pl.CostEstimate(flops=flops, transcendentals=transcendentals,
                           bytes_accessed=bytes_accessed)

    kernel = functools.partial(_fused_mlp_kernel,
                               layer_dims=tuple(layer_dims),
                               bias_offsets=tuple(bias_offsets))

    def call(single_buffer_params: bool):
        def param_spec(shape):
            # Constant-index parameter blocks: single-buffering halves their VMEM.
            if single_buffer_params:
                return pl.BlockSpec(shape, lambda i: (0, 0),
                                    pipeline_mode=pl.Buffered(1))
            return pl.BlockSpec(shape, lambda i: (0, 0))

        in_specs = ([pl.BlockSpec((k0, tm), lambda i: (0, i)),
                     param_spec(bias_packed.shape)]
                    + [param_spec(w.shape) for w in weights])
        out_spec = pl.BlockSpec((n_out, tm), lambda i: (0, i))

        return pl.pallas_call(
            kernel,
            out_shape=jax.ShapeDtypeStruct((n_out, M), x.dtype),
            grid=grid,
            in_specs=in_specs,
            out_specs=out_spec,
            compiler_params=pltpu.CompilerParams(
                # Batch tiles are independent -> shard across TCs on v7x;
                # harmless on v5e/v6e (single TC) and with grid=(1,).
                dimension_semantics=("parallel",),
                vmem_limit_bytes=vmem_limit,
            ),
            cost_estimate=cost,
        )(x_t, bias_packed, *weights)

    try:
        out_t = call(True)
        out_t.block_until_ready()   # surface any Mosaic rejection of Buffered(1)
    except Exception:
        # Fallback: default double-buffered parameter blocks (2x weight VMEM,
        # identical results) for builds that reject single buffering.
        out_t = call(False)

    return out_t.T                  # back to the module's [M, n_out] layout


def init_mlp_params(layers, key):
    """nn.Linear-shaped params: weight [out, in] ~ U(-1/sqrt(in), 1/sqrt(in)),
    bias zero-init (init=True in the reference module).  Weights kept in bf16
    (MXU-native on all TPU generations), biases in f32."""
    params = []
    for i, out_dim in enumerate(layers[1:]):
        in_dim = layers[i]
        key, sub = jax.random.split(key)
        bound = 1.0 / float(in_dim) ** 0.5
        w = jax.random.uniform(sub, (out_dim, in_dim), jnp.float32, -bound, bound)
        params.append((w.astype(jnp.bfloat16), jnp.zeros((out_dim,), jnp.float32)))
    return params


def reference_forward(params, x):
    """Pure-JAX reference with the same bf16-matmul / f32-elementwise numerics."""
    h = x.astype(jnp.float32)
    for i, (w, b) in enumerate(params):
        h = jnp.dot(h.astype(jnp.bfloat16), w.astype(jnp.bfloat16).T,
                    preferred_element_type=jnp.float32) + b
        if i < len(params) - 1:
            h = jnp.tanh(h)
    return h.astype(x.dtype)


if __name__ == "__main__":
    key = jax.random.PRNGKey(0)
    layers = [4, 32, 32, 8]          # MLP([4, 32, 32, 8])
    batch = 2

    k_in, k_p, k_big = jax.random.split(key, 3)
    x = jax.random.normal(k_in, (batch, layers[0]), jnp.float32)
    params = init_mlp_params(layers, k_p)

    out = jax.block_until_ready(mlp_forward(params, x))
    assert out.shape == (batch, layers[-1])
    ref = reference_forward(params, x)
    assert jnp.allclose(out, ref, atol=1e-2, rtol=1e-2), \
        float(jnp.max(jnp.abs(out - ref)))

    # Also exercise the lane-dense tiled path: two 128-aligned batch blocks
    # (v7x megacore split) with a partial last tile.
    x_big = jax.random.normal(k_big, (320, layers[0]), jnp.float32)
    out_big = jax.block_until_ready(mlp_forward(params, x_big))
    ref_big = reference_forward(params, x_big)
    assert out_big.shape == (320, layers[-1])
    assert jnp.allclose(out_big, ref_big, atol=1e-2, rtol=1e-2), \
        float(jnp.max(jnp.abs(out_big - ref_big)))

    print("KERNEL_OK")
</pallas_src>

<mosaic_0001>
module attributes {stable_mosaic.version = 11 : i64} {
  func.func @_fused_mlp_kernel(%arg0: i32, %arg1: memref<4x2xf32, #tpu.memory_space<vmem>>, %arg2: memref<72x1xf32, #tpu.memory_space<vmem>>, %arg3: memref<32x4xbf16, #tpu.memory_space<vmem>>, %arg4: memref<32x32xbf16, #tpu.memory_space<vmem>>, %arg5: memref<8x32xbf16, #tpu.memory_space<vmem>>, %arg6: memref<8x2xf32, #tpu.memory_space<vmem>>) attributes {dimension_semantics = [#tpu.dimension_semantics<parallel>], iteration_bounds = array<i64: 1>, scalar_prefetch = 0 : i64, scratch_operands = 0 : i64, tpu.core_type = #tpu.core_type<tc>, window_params = [{transform_indices = @transform_0, window_bounds = array<i64: 4, 2>}, {pipeline_mode = #tpu.pipeline_mode<synchronous>, transform_indices = @transform_1, window_bounds = array<i64: 72, 1>}, {pipeline_mode = #tpu.pipeline_mode<synchronous>, transform_indices = @transform_2, window_bounds = array<i64: 32, 4>}, {pipeline_mode = #tpu.pipeline_mode<synchronous>, transform_indices = @transform_3, window_bounds = array<i64: 32, 32>}, {pipeline_mode = #tpu.pipeline_mode<synchronous>, transform_indices = @transform_4, window_bounds = array<i64: 8, 32>}, {transform_indices = @transform_5, window_bounds = array<i64: 8, 2>}]} {
    %c0 = arith.constant 0 : index
    %c0_0 = arith.constant 0 : index
    %0 = vector.load %arg1[%c0, %c0_0] : memref<4x2xf32, #tpu.memory_space<vmem>>, vector<4x2xf32>
    %c0_1 = arith.constant 0 : index
    %c0_2 = arith.constant 0 : index
    %1 = vector.load %arg3[%c0_1, %c0_2] : memref<32x4xbf16, #tpu.memory_space<vmem>>, vector<32x4xbf16>
    %c0_3 = arith.constant 0 : index
    %c0_4 = arith.constant 0 : index
    %2 = vector.load %arg2[%c0_3, %c0_4] : memref<72x1xf32, #tpu.memory_space<vmem>>, vector<32x1xf32>
    %3 = arith.truncf %0 : vector<4x2xf32> to vector<4x2xbf16>
    %cst = arith.constant dense<0.000000e+00> : vector<32x2xf32>
    %4 = tpu.matmul %1, %3, %cst {dimension_numbers = #tpu.dot_dimension_numbers<[1], [0], [0], [1], [0, 0, 1, 1], [], []>} : vector<32x4xbf16>, vector<4x2xbf16>, vector<32x2xf32> -> vector<32x2xf32>
    %5 = vector.broadcast %2 : vector<32x1xf32> to vector<32x2xf32>
    %6 = arith.addf %4, %5 : vector<32x2xf32>
    %7 = math.tanh %6 : vector<32x2xf32>
    %c0_5 = arith.constant 0 : index
    %c0_6 = arith.constant 0 : index
    %8 = vector.load %arg4[%c0_5, %c0_6] : memref<32x32xbf16, #tpu.memory_space<vmem>>, vector<32x32xbf16>
    %c32 = arith.constant 32 : index
    %c0_7 = arith.constant 0 : index
    %9 = vector.load %arg2[%c32, %c0_7] : memref<72x1xf32, #tpu.memory_space<vmem>>, vector<32x1xf32>
    %10 = arith.truncf %7 : vector<32x2xf32> to vector<32x2xbf16>
    %cst_8 = arith.constant dense<0.000000e+00> : vector<32x2xf32>
    %11 = tpu.matmul %8, %10, %cst_8 {dimension_numbers = #tpu.dot_dimension_numbers<[1], [0], [0], [1], [0, 0, 1, 1], [], []>} : vector<32x32xbf16>, vector<32x2xbf16>, vector<32x2xf32> -> vector<32x2xf32>
    %12 = vector.broadcast %9 : vector<32x1xf32> to vector<32x2xf32>
    %13 = arith.addf %11, %12 : vector<32x2xf32>
    %14 = math.tanh %13 : vector<32x2xf32>
    %c0_9 = arith.constant 0 : index
    %c0_10 = arith.constant 0 : index
    %15 = vector.load %arg5[%c0_9, %c0_10] : memref<8x32xbf16, #tpu.memory_space<vmem>>, vector<8x32xbf16>
    %c64 = arith.constant 64 : index
    %c0_11 = arith.constant 0 : index
    %16 = vector.load %arg2[%c64, %c0_11] : memref<72x1xf32, #tpu.memory_space<vmem>>, vector<8x1xf32>
    %17 = arith.truncf %14 : vector<32x2xf32> to vector<32x2xbf16>
    %cst_12 = arith.constant dense<0.000000e+00> : vector<8x2xf32>
    %18 = tpu.matmul %15, %17, %cst_12 {dimension_numbers = #tpu.dot_dimension_numbers<[1], [0], [0], [1], [0, 0, 1, 1], [], []>} : vector<8x32xbf16>, vector<32x2xbf16>, vector<8x2xf32> -> vector<8x2xf32>
    %19 = vector.broadcast %16 : vector<8x1xf32> to vector<8x2xf32>
    %20 = arith.addf %18, %19 : vector<8x2xf32>
    %c0_13 = arith.constant 0 : index
    %c0_14 = arith.constant 0 : index
    %21 = vector.load %arg6[%c0_13, %c0_14] : memref<8x2xf32, #tpu.memory_space<vmem>>, vector<8x2xf32>
    tpu.vector_store %arg6[%c0_13, %c0_14], %20 {strides = array<i32>} : memref<8x2xf32, #tpu.memory_space<vmem>>, vector<8x2xf32>,
    return
  }
  func.func @transform_0(%arg0: i32) -> (i32, i32) {
    %c0_i32 = arith.constant 0 : i32
    %c0_i32_0 = arith.constant 0 : i32
    return %c0_i32, %arg0 : i32, i32
  }
  func.func @transform_1(%arg0: i32) -> (i32, i32) {
    %c0_i32 = arith.constant 0 : i32
    %c0_i32_0 = arith.constant 0 : i32
    %c0_i32_1 = arith.constant 0 : i32
    return %c0_i32, %c0_i32_0 : i32, i32
  }
  func.func @transform_2(%arg0: i32) -> (i32, i32) {
    %c0_i32 = arith.constant 0 : i32
    %c0_i32_0 = arith.constant 0 : i32
    %c0_i32_1 = arith.constant 0 : i32
    return %c0_i32, %c0_i32_0 : i32, i32
  }
  func.func @transform_3(%arg0: i32) -> (i32, i32) {
    %c0_i32 = arith.constant 0 : i32
    %c0_i32_0 = arith.constant 0 : i32
    %c0_i32_1 = arith.constant 0 : i32
    return %c0_i32, %c0_i32_0 : i32, i32
  }
  func.func @transform_4(%arg0: i32) -> (i32, i32) {
    %c0_i32 = arith.constant 0 : i32
    %c0_i32_0 = arith.constant 0 : i32
    %c0_i32_1 = arith.constant 0 : i32
    return %c0_i32, %c0_i32_0 : i32, i32
  }
  func.func @transform_5(%arg0: i32) -> (i32, i32) {
    %c0_i32 = arith.constant 0 : i32
    %c0_i32_0 = arith.constant 0 : i32
    return %c0_i32, %arg0 : i32, i32
  }
}

module attributes {stable_mosaic.version = 11 : i64} {
  func.func @_fused_mlp_kernel(%arg0: i32, %arg1: memref<4x2xf32, #tpu.memory_space<vmem>>, %arg2: memref<72x1xf32, #tpu.memory_space<vmem>>, %arg3: memref<32x4xbf16, #tpu.memory_space<vmem>>, %arg4: memref<32x32xbf16, #tpu.memory_space<vmem>>, %arg5: memref<8x32xbf16, #tpu.memory_space<vmem>>, %arg6: memref<8x2xf32, #tpu.memory_space<vmem>>) attributes {dimension_semantics = [#tpu.dimension_semantics<parallel>], iteration_bounds = array<i64: 1>, scalar_prefetch = 0 : i64, scratch_operands = 0 : i64, tpu.core_type = #tpu.core_type<tc>, window_params = [{transform_indices = @transform_0, window_bounds = array<i64: 4, 2>}, {pipeline_mode = #tpu.pipeline_mode<synchronous>, transform_indices = @transform_1, window_bounds = array<i64: 72, 1>}, {pipeline_mode = #tpu.pipeline_mode<synchronous>, transform_indices = @transform_2, window_bounds = array<i64: 32, 4>}, {pipeline_mode = #tpu.pipeline_mode<synchronous>, transform_indices = @transform_3, window_bounds = array<i64: 32, 32>}, {pipeline_mode = #tpu.pipeline_mode<synchronous>, transform_indices = @transform_4, window_bounds = array<i64: 8, 32>}, {transform_indices = @transform_5, window_bounds = array<i64: 8, 2>}]} {
    %c0 = arith.constant 0 : index
    %c0_0 = arith.constant 0 : index
    %0 = vector.load %arg1[%c0, %c0_0] : memref<4x2xf32, #tpu.memory_space<vmem>>, vector<4x2xf32>
    %c0_1 = arith.constant 0 : index
    %c0_2 = arith.constant 0 : index
    %1 = vector.load %arg3[%c0_1, %c0_2] : memref<32x4xbf16, #tpu.memory_space<vmem>>, vector<32x4xbf16>
    %c0_3 = arith.constant 0 : index
    %c0_4 = arith.constant 0 : index
    %2 = vector.load %arg2[%c0_3, %c0_4] : memref<72x1xf32, #tpu.memory_space<vmem>>, vector<32x1xf32>
    %3 = arith.truncf %0 : vector<4x2xf32> to vector<4x2xbf16>
    %cst = arith.constant dense<0.000000e+00> : vector<32x2xf32>
    %4 = tpu.matmul %1, %3, %cst {dimension_numbers = #tpu.dot_dimension_numbers<[1], [0], [0], [1], [0, 0, 1, 1], [], []>} : vector<32x4xbf16>, vector<4x2xbf16>, vector<32x2xf32> -> vector<32x2xf32>
    %5 = vector.broadcast %2 : vector<32x1xf32> to vector<32x2xf32>
    %6 = arith.addf %4, %5 : vector<32x2xf32>
    %7 = math.tanh %6 : vector<32x2xf32>
    %c0_5 = arith.constant 0 : index
    %c0_6 = arith.constant 0 : index
    %8 = vector.load %arg4[%c0_5, %c0_6] : memref<32x32xbf16, #tpu.memory_space<vmem>>, vector<32x32xbf16>
    %c32 = arith.constant 32 : index
    %c0_7 = arith.constant 0 : index
    %9 = vector.load %arg2[%c32, %c0_7] : memref<72x1xf32, #tpu.memory_space<vmem>>, vector<32x1xf32>
    %10 = arith.truncf %7 : vector<32x2xf32> to vector<32x2xbf16>
    %cst_8 = arith.constant dense<0.000000e+00> : vector<32x2xf32>
    %11 = tpu.matmul %8, %10, %cst_8 {dimension_numbers = #tpu.dot_dimension_numbers<[1], [0], [0], [1], [0, 0, 1, 1], [], []>} : vector<32x32xbf16>, vector<32x2xbf16>, vector<32x2xf32> -> vector<32x2xf32>
    %12 = vector.broadcast %9 : vector<32x1xf32> to vector<32x2xf32>
    %13 = arith.addf %11, %12 : vector<32x2xf32>
    %14 = math.tanh %13 : vector<32x2xf32>
    %c0_9 = arith.constant 0 : index
    %c0_10 = arith.constant 0 : index
    %15 = vector.load %arg5[%c0_9, %c0_10] : memref<8x32xbf16, #tpu.memory_space<vmem>>, vector<8x32xbf16>
    %c64 = arith.constant 64 : index
    %c0_11 = arith.constant 0 : index
    %16 = vector.load %arg2[%c64, %c0_11] : memref<72x1xf32, #tpu.memory_space<vmem>>, vector<8x1xf32>
    %17 = arith.truncf %14 : vector<32x2xf32> to vector<32x2xbf16>
    %cst_12 = arith.constant dense<0.000000e+00> : vector<8x2xf32>
    %18 = tpu.matmul %15, %17, %cst_12 {dimension_numbers = #tpu.dot_dimension_numbers<[1], [0], [0], [1], [0, 0, 1, 1], [], []>} : vector<8x32xbf16>, vector<32x2xbf16>, vector<8x2xf32> -> vector<8x2xf32>
    %19 = vector.broadcast %16 : vector<8x1xf32> to vector<8x2xf32>
    %20 = arith.addf %18, %19 : vector<8x2xf32>
    %c0_13 = arith.constant 0 : index
    %c0_14 = arith.constant 0 : index
    %21 = vector.load %arg6[%c0_13, %c0_14] : memref<8x2xf32, #tpu.memory_space<vmem>>, vector<8x2xf32>
    tpu.vector_store %arg6[%c0_13, %c0_14], %20 {strides = array<i32>} : memref<8x2xf32, #tpu.memory_space<vmem>>, vector<8x2xf32>,
    return
  }
  func.func @transform_0(%arg0: i32) -> (i32, i32) {
    %c0_i32 = arith.constant 0 : i32
    %c0_i32_0 = arith.constant 0 : i32
    return %c0_i32, %arg0 : i32, i32
  }
  func.func @transform_1(%arg0: i32) -> (i32, i32) {
    %c0_i32 = arith.constant 0 : i32
    %c0_i32_0 = arith.constant 0 : i32
    %c0_i32_1 = arith.constant 0 : i32
    return %c0_i32, %c0_i32_0 : i32, i32
  }
  func.func @transform_2(%arg0: i32) -> (i32, i32) {
    %c0_i32 = arith.constant 0 : i32
    %c0_i32_0 = arith.constant 0 : i32
    %c0_i32_1 = arith.constant 0 : i32
    return %c0_i32, %c0_i32_0 : i32, i32
  }
  func.func @transform_3(%arg0: i32) -> (i32, i32) {
    %c0_i32 = arith.constant 0 : i32
    %c0_i32_0 = arith.constant 0 : i32
    %c0_i32_1 = arith.constant 0 : i32
    return %c0_i32, %c0_i32_0 : i32, i32
  }
  func.func @transform_4(%arg0: i32) -> (i32, i32) {
    %c0_i32 = arith.constant 0 : i32
    %c0_i32_0 = arith.constant 0 : i32
    %c0_i32_1 = arith.constant 0 : i32
    return %c0_i32, %c0_i32_0 : i32, i32
  }
  func.func @transform_5(%arg0: i32) -> (i32, i32) {
    %c0_i32 = arith.constant 0 : i32
    %c0_i32_0 = arith.constant 0 : i32
    return %c0_i32, %arg0 : i32, i32
  }
}

</mosaic_0001>

<bundles_post_ra>
// kernel: tpu_custom_call.1
= control target key start
LH: loop header
LB: loop body
LE: loop exit
PB: predicated region body
PF: predicated region fallthrough
CT: control target
= control target key end

     0   :  { %vm68_vm0 = vcmask 1041408   ;;  %v243_v1 = vmov 0   ;;  %vm61_vm1 = vcmask 31744   ;;  %vm135_vm2 = vcmask 261120   ;;  %s325_s0 = inlined_call_operand.vmem [shape: f32[4,2], index: 0, kind: input, shape index: {}]   ;;  %s326_s1 = inlined_call_operand.vmem [shape: f32[72,1], index: 1, kind: input, shape index: {}]   ;;  %s327_s2 = inlined_call_operand.vmem [shape: bf16[32,4], index: 2, kind: input, shape index: {}]   ;;  %s328_s3 = inlined_call_operand.vmem [shape: bf16[32,32], index: 3, kind: input, shape index: {}]   ;;  %s329_s4 = inlined_call_operand.vmem [shape: bf16[8,32], index: 4, kind: input, shape index: {}]   ;;  %s330_s5 = inlined_call_operand.vmem [shape: f32[8,2], index: 5, kind: output, shape index: {}]  }
   0x1   :  { %v21_v0 = vld [vmem:[%s325_s0] sm:$0xf]  ;;  %225 = vset.pattern.permute.xlu1 %v243_v1  ;;  %224 = vset.pattern.permute.xlu0 %v243_v1  ;;  %v28_v2 = vld [vmem:[%s326_s1 + $0x10] sm:$0xff]  ;;  %v29_v7 = vld [vmem:[%s326_s1 + $0x18] sm:$0xff]  ;;  %vm190_vm3 = vcmask 15360  }
   0x2   :  { %v30_v3 = vpack.c.bf16 %v21_v0, %v21_v0  ;;  %43 = vperm.xlu0 %224, %v28_v2   ;;  %v26_v4 = vld [vmem:[%s326_s1] sm:$0xff]  ;;  %226 = vset.pattern.permute.xlu2 %v243_v1  ;;  %v27_v8 = vld [vmem:[%s326_s1 + $0x8] sm:$0xff]  ;;  %v101_v14 = vld [vmem:[%s326_s1 + $0x30] sm:$0xff] }
   0x3   :  { %33 = vperm.xlu1 %225, %v26_v4   ;;  %v217_v6 = vld [vmem:[%s327_s2] sm:$0xff]  ;;  %v100_v10 = vld [vmem:[%s326_s1 + $0x28] sm:$0xff]  ;;  %117 = vperm.xlu2 %226, %v101_v14   ;;  %v102_v18 = vld [vmem:[%s326_s1 + $0x38] sm:$0xff] }
   0x4   :  { %v70_v5 = vsel %vm68_vm0, %v30_v3, 0  ;;  %v99_v9 = vld [vmem:[%s326_s1 + $0x20] sm:$0xff]  ;;  %v218_v11 = vld [vmem:[%s327_s2 + $0x8] sm:$0xff] }
   0x5   :  { %79 = vmatpush.bf16.msra.mxu0 %v70_v5  ;;  %v166_v25 = vld [vmem:[%s326_s1 + $0x40] sm:$0xff]  ;;  %v220_v34 = vld [vmem:[%s328_s3 + $0x8] sm:$0xff] }
   0x6   :  { %v219_v33 = vld [vmem:[%s328_s3] sm:$0xff] }
   0x7   :  { %v165_v53 = vld [vmem:[%s329_s4] sm:$0xf] }
   0x8   :  { %204 = vmatmul.msk.bf16.vlgmr.msra.gmra.mxu0 %vm61_vm1, %v217_v6 }
   0xa   :  { %48 = vperm.xlu0 %224, %v29_v7  }
   0xb   :  { %38 = vperm.xlu1 %225, %v27_v8   ;;  %122 = vperm.xlu2 %226, %v102_v18  }
  0x12   :  { %107 = vperm.xlu0 %224, %v99_v9  }
  0x13   :  { %112 = vperm.xlu1 %225, %v100_v10   ;;  %171 = vperm.xlu2 %226, %v166_v25  }
  0x18   :  { %205 = vmatmul.msk.bf16.gmra.mxu0 %vm61_vm1, %v218_v11 }
  0x5d   :  { %v118_v36 = vpop.permute.xlu2 %117 }
  0x65   :  { %v123_v41 = vpop.permute.xlu2 %122 }
  0x6d   :  { %v172_v54 = vpop.permute.xlu2 %171 }
  0x74   :  { %v44_v16 = vpop.permute.xlu0 %43 }
  0x75   :  { %v34_v15 = vpop.permute.xlu1 %33 }
  0x7c   :  { %v49_v21 = vpop.permute.xlu0 %48 }
  0x7d   :  { %v39_v19 = vpop.permute.xlu1 %38 }
  0x84   :  { %v108_v45 = vpop.permute.xlu0 %107 }
  0x85   :  { %v81_v12 = vpop.f32.mrf.mxu0  ;;  %v113_v40 = vpop.permute.xlu1 %112 }
  0x86   :  { %v82_v26 = vadd.f32 %v81_v12, %v34_v15 }
  0x8d   :  { %v83_v13 = vpop.f32.mrf.mxu0 }
  0x8e   :  { %v84_v23 = vadd.f32 %v83_v13, %v39_v19 }
  0x95   :  { %v86_v17 = vpop.f32.mrf.mxu0 }
  0x96   :  { %v87_v20 = vadd.f32 %v86_v17, %v44_v16 }
  0x98   :  { %227 = vtanh.f32 %v87_v20 }
  0x9d   :  { %v88_v22 = vpop.f32.mrf.mxu0 }
  0x9e   :  { %v89_v24 = vadd.f32 %v88_v22, %v49_v21  ;;  %v228_v27 = vpop.eup %227 }
  0xa0   :  { %229 = vtanh.f32 %v89_v24 }
  0xa1   :  { %231 = vtanh.f32 %v84_v23 }
  0xa2   :  { %233 = vtanh.f32 %v82_v26 }
  0xa6   :  { %v230_v28 = vpop.eup %229 }
  0xa7   :  { %v104_v29 = vpack.c.bf16 %v230_v28, %v228_v27  ;;  %v232_v30 = vpop.eup %231 }
  0xa8   :  { %v234_v31 = vpop.eup %233 }
  0xa9   :  { %148 = vmatpush.bf16.msra.mxu1 %v104_v29  ;;  %221 = vmatpush.bf16.msra.mxu3 %v104_v29  ;;  %v103_v32 = vpack.c.bf16 %v232_v30, %v234_v31 }
  0xad   :  { %149 = vmatpush.bf16.msra.mxu1 %v103_v32  ;;  %222 = vmatpush.bf16.msra.mxu3 %v103_v32 }
  0xb0   :  { %214 = vmatmul.msk.bf16.vlgmr.msra.gmra.mxu1 %vm135_vm2, %v219_v33  ;;  %215 = vmatmul.msk.bf16.vlgmr.msra.gmra.mxu3 %vm135_vm2, %v220_v34 }
 0x12d   :  { %v151_v35 = vpop.f32.mrf.mxu1 }
 0x12e   :  { %v152_v46 = vadd.f32 %v151_v35, %v108_v45 }
 0x133   :  { %v156_v37 = vpop.f32.mrf.mxu3 }
 0x134   :  { %v157_v38 = vadd.f32 %v156_v37, %v118_v36 }
 0x135   :  { %v153_v39 = vpop.f32.mrf.mxu1 }
 0x136   :  { %v154_v43 = vadd.f32 %v153_v39, %v113_v40  ;;  %235 = vtanh.f32 %v157_v38 }
 0x13b   :  { %v158_v42 = vpop.f32.mrf.mxu3 }
 0x13c   :  { %v159_v44 = vadd.f32 %v158_v42, %v123_v41  ;;  %v236_v47 = vpop.eup %235 }
 0x13e   :  { %237 = vtanh.f32 %v159_v44 }
 0x13f   :  { %239 = vtanh.f32 %v154_v43 }
 0x140   :  { %241 = vtanh.f32 %v152_v46 }
 0x144   :  { %v238_v48 = vpop.eup %237 }
 0x145   :  { %v168_v49 = vpack.c.bf16 %v238_v48, %v236_v47  ;;  %v240_v50 = vpop.eup %239 }
 0x146   :  { %v242_v51 = vpop.eup %241 }
 0x147   :  { %183 = vmatpush.bf16.msra.mxu2 %v168_v49  ;;  %v167_v52 = vpack.c.bf16 %v240_v50, %v242_v51 }
 0x14b   :  { %184 = vmatpush.bf16.msra.mxu2 %v167_v52 }
 0x14e   :  { %216 = vmatmul.msk.bf16.vlgmr.msra.gmra.mxu2 %vm135_vm2, %v165_v53 }
 0x1d1   :  { %v186_v55 = vpop.f32.mrf.mxu2 }
 0x1d2   :  { %v187_v56 = vadd.f32 %v186_v55, %v172_v54 }
 0x1d4   :  { %191 = vst.msk [vmem:[%s330_s5] sm:$0xff] %vm190_vm3, %v187_v56 }
 0x1d9   :  { %v188_v57 = vpop.f32.mrf.mxu2 }

// kernel: tpu_custom_call.1
= control target key start
LH: loop header
LB: loop body
LE: loop exit
PB: predicated region body
PF: predicated region fallthrough
CT: control target
= control target key end

     0   :  { %vm68_vm0 = vcmask 1041408   ;;  %v243_v1 = vmov 0   ;;  %vm61_vm1 = vcmask 31744   ;;  %vm135_vm2 = vcmask 261120   ;;  %s325_s0 = inlined_call_operand.vmem [shape: f32[4,2], index: 0, kind: input, shape index: {}]   ;;  %s326_s1 = inlined_call_operand.vmem [shape: f32[72,1], index: 1, kind: input, shape index: {}]   ;;  %s327_s2 = inlined_call_operand.vmem [shape: bf16[32,4], index: 2, kind: input, shape index: {}]   ;;  %s328_s3 = inlined_call_operand.vmem [shape: bf16[32,32], index: 3, kind: input, shape index: {}]   ;;  %s329_s4 = inlined_call_operand.vmem [shape: bf16[8,32], index: 4, kind: input, shape index: {}]   ;;  %s330_s5 = inlined_call_operand.vmem [shape: f32[8,2], index: 5, kind: output, shape index: {}]  }
   0x1   :  { %v21_v0 = vld [vmem:[%s325_s0] sm:$0xf]  ;;  %225 = vset.pattern.permute.xlu1 %v243_v1  ;;  %224 = vset.pattern.permute.xlu0 %v243_v1  ;;  %v28_v2 = vld [vmem:[%s326_s1 + $0x10] sm:$0xff]  ;;  %v29_v7 = vld [vmem:[%s326_s1 + $0x18] sm:$0xff]  ;;  %vm190_vm3 = vcmask 15360  }
   0x2   :  { %v30_v3 = vpack.c.bf16 %v21_v0, %v21_v0  ;;  %43 = vperm.xlu0 %224, %v28_v2   ;;  %v26_v4 = vld [vmem:[%s326_s1] sm:$0xff]  ;;  %226 = vset.pattern.permute.xlu2 %v243_v1  ;;  %v27_v8 = vld [vmem:[%s326_s1 + $0x8] sm:$0xff]  ;;  %v101_v14 = vld [vmem:[%s326_s1 + $0x30] sm:$0xff] }
   0x3   :  { %33 = vperm.xlu1 %225, %v26_v4   ;;  %v217_v6 = vld [vmem:[%s327_s2] sm:$0xff]  ;;  %v100_v10 = vld [vmem:[%s326_s1 + $0x28] sm:$0xff]  ;;  %117 = vperm.xlu2 %226, %v101_v14   ;;  %v102_v18 = vld [vmem:[%s326_s1 + $0x38] sm:$0xff] }
   0x4   :  { %v70_v5 = vsel %vm68_vm0, %v30_v3, 0  ;;  %v99_v9 = vld [vmem:[%s326_s1 + $0x20] sm:$0xff]  ;;  %v218_v11 = vld [vmem:[%s327_s2 + $0x8] sm:$0xff] }
   0x5   :  { %79 = vmatpush.bf16.msra.mxu0 %v70_v5  ;;  %v166_v25 = vld [vmem:[%s326_s1 + $0x40] sm:$0xff]  ;;  %v220_v34 = vld [vmem:[%s328_s3 + $0x8] sm:$0xff] }
   0x6   :  { %v219_v33 = vld [vmem:[%s328_s3] sm:$0xff] }
   0x7   :  { %v165_v53 = vld [vmem:[%s329_s4] sm:$0xf] }
   0x8   :  { %204 = vmatmul.msk.bf16.vlgmr.msra.gmra.mxu0 %vm61_vm1, %v217_v6 }
   0xa   :  { %48 = vperm.xlu0 %224, %v29_v7  }
   0xb   :  { %38 = vperm.xlu1 %225, %v27_v8   ;;  %122 = vperm.xlu2 %226, %v102_v18  }
  0x12   :  { %107 = vperm.xlu0 %224, %v99_v9  }
  0x13   :  { %112 = vperm.xlu1 %225, %v100_v10   ;;  %171 = vperm.xlu2 %226, %v166_v25  }
  0x18   :  { %205 = vmatmul.msk.bf16.gmra.mxu0 %vm61_vm1, %v218_v11 }
  0x5d   :  { %v118_v36 = vpop.permute.xlu2 %117 }
  0x65   :  { %v123_v41 = vpop.permute.xlu2 %122 }
  0x6d   :  { %v172_v54 = vpop.permute.xlu2 %171 }
  0x74   :  { %v44_v16 = vpop.permute.xlu0 %43 }
  0x75   :  { %v34_v15 = vpop.permute.xlu1 %33 }
  0x7c   :  { %v49_v21 = vpop.permute.xlu0 %48 }
  0x7d   :  { %v39_v19 = vpop.permute.xlu1 %38 }
  0x84   :  { %v108_v45 = vpop.permute.xlu0 %107 }
  0x85   :  { %v81_v12 = vpop.f32.mrf.mxu0  ;;  %v113_v40 = vpop.permute.xlu1 %112 }
  0x86   :  { %v82_v26 = vadd.f32 %v81_v12, %v34_v15 }
  0x8d   :  { %v83_v13 = vpop.f32.mrf.mxu0 }
  0x8e   :  { %v84_v23 = vadd.f32 %v83_v13, %v39_v19 }
  0x95   :  { %v86_v17 = vpop.f32.mrf.mxu0 }
  0x96   :  { %v87_v20 = vadd.f32 %v86_v17, %v44_v16 }
  0x98   :  { %227 = vtanh.f32 %v87_v20 }
  0x9d   :  { %v88_v22 = vpop.f32.mrf.mxu0 }
  0x9e   :  { %v89_v24 = vadd.f32 %v88_v22, %v49_v21  ;;  %v228_v27 = vpop.eup %227 }
  0xa0   :  { %229 = vtanh.f32 %v89_v24 }
  0xa1   :  { %231 = vtanh.f32 %v84_v23 }
  0xa2   :  { %233 = vtanh.f32 %v82_v26 }
  0xa6   :  { %v230_v28 = vpop.eup %229 }
  0xa7   :  { %v104_v29 = vpack.c.bf16 %v230_v28, %v228_v27  ;;  %v232_v30 = vpop.eup %231 }
  0xa8   :  { %v234_v31 = vpop.eup %233 }
  0xa9   :  { %148 = vmatpush.bf16.msra.mxu1 %v104_v29  ;;  %221 = vmatpush.bf16.msra.mxu3 %v104_v29  ;;  %v103_v32 = vpack.c.bf16 %v232_v30, %v234_v31 }
  0xad   :  { %149 = vmatpush.bf16.msra.mxu1 %v103_v32  ;;  %222 = vmatpush.bf16.msra.mxu3 %v103_v32 }
  0xb0   :  { %214 = vmatmul.msk.bf16.vlgmr.msra.gmra.mxu1 %vm135_vm2, %v219_v33  ;;  %215 = vmatmul.msk.bf16.vlgmr.msra.gmra.mxu3 %vm135_vm2, %v220_v34 }
 0x12d   :  { %v151_v35 = vpop.f32.mrf.mxu1 }
 0x12e   :  { %v152_v46 = vadd.f32 %v151_v35, %v108_v45 }
 0x133   :  { %v156_v37 = vpop.f32.mrf.mxu3 }
 0x134   :  { %v157_v38 = vadd.f32 %v156_v37, %v118_v36 }
 0x135   :  { %v153_v39 = vpop.f32.mrf.mxu1 }
 0x136   :  { %v154_v43 = vadd.f32 %v153_v39, %v113_v40  ;;  %235 = vtanh.f32 %v157_v38 }
 0x13b   :  { %v158_v42 = vpop.f32.mrf.mxu3 }
 0x13c   :  { %v159_v44 = vadd.f32 %v158_v42, %v123_v41  ;;  %v236_v47 = vpop.eup %235 }
 0x13e   :  { %237 = vtanh.f32 %v159_v44 }
 0x13f   :  { %239 = vtanh.f32 %v154_v43 }
 0x140   :  { %241 = vtanh.f32 %v152_v46 }
 0x144   :  { %v238_v48 = vpop.eup %237 }
 0x145   :  { %v168_v49 = vpack.c.bf16 %v238_v48, %v236_v47  ;;  %v240_v50 = vpop.eup %239 }
 0x146   :  { %v242_v51 = vpop.eup %241 }
 0x147   :  { %183 = vmatpush.bf16.msra.mxu2 %v168_v49  ;;  %v167_v52 = vpack.c.bf16 %v240_v50, %v242_v51 }
 0x14b   :  { %184 = vmatpush.bf16.msra.mxu2 %v167_v52 }
 0x14e   :  { %216 = vmatmul.msk.bf16.vlgmr.msra.gmra.mxu2 %vm135_vm2, %v165_v53 }
 0x1d1   :  { %v186_v55 = vpop.f32.mrf.mxu2 }
 0x1d2   :  { %v187_v56 = vadd.f32 %v186_v55, %v172_v54 }
 0x1d4   :  { %191 = vst.msk [vmem:[%s330_s5] sm:$0xff] %vm190_vm3, %v187_v56 }
 0x1d9   :  { %v188_v57 = vpop.f32.mrf.mxu2 }

</bundles_post_ra>
